<compile_context>
chip_gen: v6e
topology: v6e:2x2x1
jax: 0.10.0
libtpu: 0.0.40
codegen_flags: <defaults>
</compile_context>

<pallas_src>
import functools
import math

import jax
import jax.numpy as jnp
from jax import lax
from jax.experimental import pallas as pl
from jax.experimental.pallas import tpu as pltpu

_LANES = 128
_SUBLANES = 8
_MAX_BLOCK_ROWS = 2048   # (2048, 128) f32 = 1 MiB per operand per pipeline buffer


def _dice_sums_kernel(p_ref, l_ref, inter_ref, sum_ref, *,
                      rows, block_rows, mask_from):
    """Accumulate per-(sublane,lane) partial sums of p*l and p+l into the outputs.

    Grid is (n_split, steps): axis 0 is a parallel "core" split (v7x megacore),
    axis 1 is the sequential reduction.  Output blocks (one (8,128) block per
    core row, same block across the reduction axis) act as the accumulators.
    """
    c = pl.program_id(0)          # parallel split axis
    i = pl.program_id(1)          # sequential reduction axis
    steps = pl.num_programs(1)

    @pl.when(i == 0)
    def _init():
        inter_ref[...] = jnp.zeros_like(inter_ref)
        sum_ref[...] = jnp.zeros_like(sum_ref)

    p = p_ref[...].astype(jnp.float32)   # native-dtype DMA, f32 math/accumulate
    l = l_ref[...].astype(jnp.float32)
    r8 = block_rows // _SUBLANES

    def _accum(pv, lv):
        # (block_rows,128) -> (r8,8,128); summing the leading (vreg) axis is pure
        # VALU adds, keeping the steady-state loop on vld + VALU only.
        inter_ref[...] += (pv * lv).reshape(r8, _SUBLANES, _LANES).sum(axis=0)
        sum_ref[...] += (pv + lv).reshape(r8, _SUBLANES, _LANES).sum(axis=0)

    if mask_from is None:
        # Every block is full and in-bounds: no masking anywhere.
        _accum(p, l)
    else:
        b = c * steps + i              # intended (unclamped) block index

        @pl.when(b < mask_from)
        def _full_blocks():
            _accum(p, l)

        @pl.when(b >= mask_from)
        def _tail_blocks():
            # Partial last block and/or duplicated out-of-range blocks: rows at or
            # beyond `rows` carry unspecified data and must be zeroed.
            start = b * block_rows
            ridx = lax.broadcasted_iota(jnp.int32, (block_rows, _LANES), 0) + start
            valid = ridx < rows
            _accum(jnp.where(valid, p, 0.0), jnp.where(valid, l, 0.0))


def dice_loss(preds, labels, *, smooth=1.0, eps=1e-7):
    # `eps` kept for API parity with the PyTorch module; its forward() never uses it.
    del eps
    assert preds.shape == labels.shape
    total = int(math.prod(preds.shape))

    def _prep(x):
        x = x.reshape(-1)
        if (not jnp.issubdtype(x.dtype, jnp.floating)) or x.dtype.itemsize > 4:
            x = x.astype(jnp.float32)   # bool / int masks, f64 -> f32
        return x

    p = _prep(preds)
    l = _prep(labels)

    # Lane/sublane-dense (rows, 128) view.  When numel is a multiple of 8*128 the
    # reshape is a free bitcast; otherwise pad by < 1024 zeros (zeros do not
    # perturb any of the sums).
    group = _SUBLANES * _LANES
    padded = -(-total // group) * group
    if padded != total:
        p = jnp.pad(p, (0, padded - total))
        l = jnp.pad(l, (0, padded - total))
    rows = padded // _LANES                      # multiple of 8
    p2 = p.reshape(rows, _LANES)
    l2 = l.reshape(rows, _LANES)

    block_rows = min(_MAX_BLOCK_ROWS, rows)
    n_blocks = -(-rows // block_rows)            # cdiv
    n_split = 2 if n_blocks >= 2 else 1          # both TensorCores on v7x
    steps = -(-n_blocks // n_split)

    if rows % block_rows != 0:
        mask_from = n_blocks - 1                 # last real block is partial
    elif n_split * steps != n_blocks:
        mask_from = n_blocks                     # only duplicated trailing blocks
    else:
        mask_from = None                         # no masking needed at all

    if n_split * steps == n_blocks:
        in_map = lambda c, i: (c * steps + i, 0)
    else:
        # Clamp duplicated trailing block indices to valid memory; their
        # contribution is zeroed in-kernel by the row mask.
        in_map = lambda c, i: (jnp.minimum(c * steps + i, n_blocks - 1), 0)
    out_map = lambda c, i: (c, 0)

    kernel = functools.partial(
        _dice_sums_kernel, rows=rows, block_rows=block_rows, mask_from=mask_from)

    inter_part, sum_part = pl.pallas_call(
        kernel,
        out_shape=(
            jax.ShapeDtypeStruct((n_split * _SUBLANES, _LANES), jnp.float32),
            jax.ShapeDtypeStruct((n_split * _SUBLANES, _LANES), jnp.float32),
        ),
        grid_spec=pltpu.PrefetchScalarGridSpec(
            num_scalar_prefetch=0,
            grid=(n_split, steps),
            in_specs=[
                pl.BlockSpec((block_rows, _LANES), in_map),
                pl.BlockSpec((block_rows, _LANES), in_map),
            ],
            out_specs=[
                pl.BlockSpec((_SUBLANES, _LANES), out_map),
                pl.BlockSpec((_SUBLANES, _LANES), out_map),
            ],
        ),
        compiler_params=pltpu.CompilerParams(
            dimension_semantics=("parallel", "arbitrary"),
        ),
    )(p2, l2)

    # Tiny epilogue: cross-lane/core reduce + scalar dice arithmetic.
    inter = jnp.sum(inter_part)                  # sum(preds * labels)
    both = jnp.sum(sum_part)                     # sum(preds) + sum(labels)
    smooth = jnp.float32(smooth)
    return 1.0 - (2.0 * inter + smooth) / (both + smooth)


if __name__ == "__main__":
    key = jax.random.PRNGKey(0)
    kp, kl = jax.random.split(key)

    B, C, H, W = 2, 4, 16, 16
    preds = jax.random.uniform(kp, (B, C, H, W), jnp.float32)                  # e.g. sigmoid outputs
    labels = (jax.random.uniform(kl, (B, C, H, W)) > 0.5).astype(jnp.float32)  # binary masks

    smooth = 1.0
    loss_fn = jax.jit(functools.partial(dice_loss, smooth=smooth))
    loss = loss_fn(preds, labels)
    jax.block_until_ready(loss)

    # pure-JAX reference of the PyTorch forward
    ref = 1.0 - (2.0 * jnp.sum(preds * labels) + smooth) / (
        jnp.sum(preds) + jnp.sum(labels) + smooth
    )
    assert loss.shape == () and bool(jnp.isfinite(loss))
    assert bool(jnp.allclose(loss, ref, rtol=1e-5, atol=1e-6)), (loss, ref)
    print("KERNEL_OK")
</pallas_src>

<mosaic_0001>
module attributes {stable_mosaic.version = 11 : i64} {
  func.func @_dice_sums_kernel(%arg0: i32, %arg1: i32, %arg2: memref<16x128xf32, #tpu.memory_space<vmem>>, %arg3: memref<16x128xf32, #tpu.memory_space<vmem>>, %arg4: memref<8x128xf32, #tpu.memory_space<vmem>>, %arg5: memref<8x128xf32, #tpu.memory_space<vmem>>) attributes {dimension_semantics = [#tpu.dimension_semantics<parallel>, #tpu.dimension_semantics<arbitrary>], iteration_bounds = array<i64: 1, 1>, scalar_prefetch = 0 : i64, scratch_operands = 0 : i64, tpu.core_type = #tpu.core_type<tc>, window_params = [{transform_indices = @transform_0, window_bounds = array<i64: 16, 128>}, {transform_indices = @transform_1, window_bounds = array<i64: 16, 128>}, {transform_indices = @transform_2, window_bounds = array<i64: 8, 128>}, {transform_indices = @transform_3, window_bounds = array<i64: 8, 128>}]} {
    %c0_i32 = arith.constant 0 : i32
    %0 = arith.cmpi eq, %arg1, %c0_i32 : i32
    %1 = arith.extui %0 : i1 to i32
    %c0_i32_0 = arith.constant 0 : i32
    %2 = arith.cmpi ne, %1, %c0_i32_0 : i32
    scf.if %2 {
      %cst_13 = arith.constant 0.000000e+00 : f32
      %17 = vector.broadcast %cst_13 : f32 to vector<8x128xf32>
      %c0_14 = arith.constant 0 : index
      %c0_15 = arith.constant 0 : index
      %18 = vector.load %arg4[%c0_14, %c0_15] : memref<8x128xf32, #tpu.memory_space<vmem>>, vector<8x128xf32>
      tpu.vector_store %arg4[%c0_14, %c0_15], %17 {strides = array<i32>} : memref<8x128xf32, #tpu.memory_space<vmem>>, vector<8x128xf32>,
      %cst_16 = arith.constant 0.000000e+00 : f32
      %19 = vector.broadcast %cst_16 : f32 to vector<8x128xf32>
      %c0_17 = arith.constant 0 : index
      %c0_18 = arith.constant 0 : index
      %20 = vector.load %arg5[%c0_17, %c0_18] : memref<8x128xf32, #tpu.memory_space<vmem>>, vector<8x128xf32>
      tpu.vector_store %arg5[%c0_17, %c0_18], %19 {strides = array<i32>} : memref<8x128xf32, #tpu.memory_space<vmem>>, vector<8x128xf32>,
    } else {
    }
    %c0 = arith.constant 0 : index
    %c0_1 = arith.constant 0 : index
    %3 = vector.load %arg2[%c0, %c0_1] : memref<16x128xf32, #tpu.memory_space<vmem>>, vector<16x128xf32>
    %c0_2 = arith.constant 0 : index
    %c0_3 = arith.constant 0 : index
    %4 = vector.load %arg3[%c0_2, %c0_3] : memref<16x128xf32, #tpu.memory_space<vmem>>, vector<16x128xf32>
    %c0_4 = arith.constant 0 : index
    %c0_5 = arith.constant 0 : index
    %5 = vector.load %arg4[%c0_4, %c0_5] : memref<8x128xf32, #tpu.memory_space<vmem>>, vector<8x128xf32>
    %6 = arith.mulf %3, %4 : vector<16x128xf32>
    %7 = vector.shape_cast %6 : vector<16x128xf32> to vector<2x8x128xf32>
    %cst = arith.constant dense<0.000000e+00> : vector<8x128xf32>
    %8 = vector.multi_reduction <add>, %7, %cst [0] : vector<2x8x128xf32> to vector<8x128xf32>
    %9 = arith.addf %5, %8 : vector<8x128xf32>
    %c0_6 = arith.constant 0 : index
    %c0_7 = arith.constant 0 : index
    %10 = vector.load %arg4[%c0_6, %c0_7] : memref<8x128xf32, #tpu.memory_space<vmem>>, vector<8x128xf32>
    tpu.vector_store %arg4[%c0_6, %c0_7], %9 {strides = array<i32>} : memref<8x128xf32, #tpu.memory_space<vmem>>, vector<8x128xf32>,
    %c0_8 = arith.constant 0 : index
    %c0_9 = arith.constant 0 : index
    %11 = vector.load %arg5[%c0_8, %c0_9] : memref<8x128xf32, #tpu.memory_space<vmem>>, vector<8x128xf32>
    %12 = arith.addf %3, %4 : vector<16x128xf32>
    %13 = vector.shape_cast %12 : vector<16x128xf32> to vector<2x8x128xf32>
    %cst_10 = arith.constant dense<0.000000e+00> : vector<8x128xf32>
    %14 = vector.multi_reduction <add>, %13, %cst_10 [0] : vector<2x8x128xf32> to vector<8x128xf32>
    %15 = arith.addf %11, %14 : vector<8x128xf32>
    %c0_11 = arith.constant 0 : index
    %c0_12 = arith.constant 0 : index
    %16 = vector.load %arg5[%c0_11, %c0_12] : memref<8x128xf32, #tpu.memory_space<vmem>>, vector<8x128xf32>
    tpu.vector_store %arg5[%c0_11, %c0_12], %15 {strides = array<i32>} : memref<8x128xf32, #tpu.memory_space<vmem>>, vector<8x128xf32>,
    return
  }
  func.func @transform_0(%arg0: i32, %arg1: i32) -> (i32, i32) {
    %c1_i32 = arith.constant 1 : i32
    %0 = arith.muli %arg0, %c1_i32 : i32
    %1 = arith.addi %0, %arg1 : i32
    %c0_i32 = arith.constant 0 : i32
    %c0_i32_0 = arith.constant 0 : i32
    return %1, %c0_i32 : i32, i32
  }
  func.func @transform_1(%arg0: i32, %arg1: i32) -> (i32, i32) {
    %c1_i32 = arith.constant 1 : i32
    %0 = arith.muli %arg0, %c1_i32 : i32
    %1 = arith.addi %0, %arg1 : i32
    %c0_i32 = arith.constant 0 : i32
    %c0_i32_0 = arith.constant 0 : i32
    return %1, %c0_i32 : i32, i32
  }
  func.func @transform_2(%arg0: i32, %arg1: i32) -> (i32, i32) {
    %c0_i32 = arith.constant 0 : i32
    %c0_i32_0 = arith.constant 0 : i32
    return %arg0, %c0_i32 : i32, i32
  }
  func.func @transform_3(%arg0: i32, %arg1: i32) -> (i32, i32) {
    %c0_i32 = arith.constant 0 : i32
    %c0_i32_0 = arith.constant 0 : i32
    return %arg0, %c0_i32 : i32, i32
  }
}

</mosaic_0001>

<bundles_post_ra>
// kernel: dice_loss.1
= control target key start
LH: loop header
LB: loop body
LE: loop exit
PB: predicated region body
PF: predicated region fallthrough
CT: control target
= control target key end

     0   :  { %s138_s0 = inlined_call_operand.vmem [shape: f32[16,128], index: 0, kind: input, shape index: {}]   ;;  %s139_s1 = inlined_call_operand.vmem [shape: f32[16,128], index: 1, kind: input, shape index: {}]   ;;  %s140_s2 = inlined_call_operand.vmem [shape: f32[8,128], index: 2, kind: output, shape index: {0}]   ;;  %s141_s3 = inlined_call_operand.vmem [shape: f32[8,128], index: 3, kind: output, shape index: {1}]  }
   0x1   :  { %v63_v0 = vld [vmem:[%s138_s0] sm:$0xff]  ;;  %v64_v1 = vld [vmem:[%s138_s0 + $0x8] sm:$0xff] }
   0x2   :  { %v65_v2 = vld [vmem:[%s139_s1] sm:$0xff]  ;;  %v66_v3 = vld [vmem:[%s139_s1 + $0x8] sm:$0xff] }
   0x3   :  { %v68_v4 = vmul.f32 %v65_v2, %v63_v0  ;;  %v74_v5 = vadd.f32 %v65_v2, %v63_v0  ;;  %v69_v6 = vmul.f32 %v66_v3, %v64_v1  ;;  %v75_v7 = vadd.f32 %v66_v3, %v64_v1 }
   0x5   :  { %v70_v8 = vadd.f32 %v69_v6, %v68_v4  ;;  %v76_v9 = vadd.f32 %v75_v7, %v74_v5 }
   0x7   :  { %72 = vst [vmem:[%s140_s2] sm:$0xff] %v70_v8  ;;  %78 = vst [vmem:[%s141_s3] sm:$0xff] %v76_v9 }

</bundles_post_ra>
